<compile_context>
chip_gen: v5e
topology: v5e:2x2
jax: 0.10.0
libtpu: 0.0.40
codegen_flags: <defaults>
</compile_context>

<pallas_src>
import functools

import jax
import jax.numpy as jnp
from jax import lax
from jax.experimental import pallas as pl
from jax.experimental.pallas import tpu as pltpu

# --- model hyperparameters (module values; vocab is tiny-shakespeare-like) ---
D_MODEL = 512           # d_model from the module
BLOCK_SIZE = 256        # positional table size (as in the module)
VOCAB_SIZE = 65         # len(chars)
V_PAD = 128             # vocab padded to a full lane width
K_EMB = V_PAD + BLOCK_SIZE   # concatenated (folded) table rows (384)
TILE_M = 1024           # rows of flattened (B*T) per grid step


def _round_up(x, m):
    return ((x + m - 1) // m) * m


def _bigram_kernel(ids_ref, table_ref, o_ref):
    """One M-tile of the flattened (B*T, V_PAD) logits per grid step.

    ids_ref:   (TM, 2) int32    col0 = token id (< V_PAD),
                                col1 = V_PAD + position
    table_ref: (K_EMB, V_PAD) bf16  rows [0:V_PAD)  = tok_table @ W (padded),
                                    rows [V_PAD:)   = pos_table @ W + b (padded)
    o_ref:     (TM, V_PAD) f32  logits tile
    """
    tm = o_ref.shape[0]
    ids = ids_ref[...]                                          # (TM, 2)
    iota = lax.broadcasted_iota(jnp.int32, (tm, K_EMB), 1)
    hit = (iota == ids[:, 0:1]) | (iota == ids[:, 1:2])         # 2 hits / row
    one_hot = hit.astype(jnp.bfloat16)                          # (TM, K_EMB)
    # Single fused gather+linear: tok@W + (pos@W + b) in one MXU pass.  f32
    # accumulation is exact here (only two bf16 rows are selected per output
    # row; all other products are exactly zero).
    o_ref[...] = jnp.dot(one_hot, table_ref[...],
                         preferred_element_type=jnp.float32)


def bigram_logits(ids, table, *, tile_m=TILE_M):
    """ids: (M, 2) int32; table: (K_EMB, V_PAD) bf16 -> (M, V_PAD) f32 logits
    (padded vocab columns included; caller slices them off)."""
    M = ids.shape[0]

    if M <= tile_m:
        # Single block (no forced split on single-TC v5e/v6e); round rows to a
        # multiple of 16 so bf16 sublane pairs of the one-hot LHS stay full.
        tm = _round_up(max(M, 16), 16)
        n_blocks = 1
    else:
        tm = tile_m
        n_blocks = -(-M // tm)
        if n_blocks % 2 == 1:
            # Even number of parallel grid steps -> balanced across v7x's two
            # TensorCores; one extra padded step is negligible at this size.
            n_blocks += 1
    m_pad = n_blocks * tm

    if m_pad != M:
        # Padded rows get ids (0, 0): a single hit on folded-token row 0.
        # Harmless — those output rows are discarded below.
        ids = jnp.concatenate(
            [ids, jnp.zeros((m_pad - M, 2), jnp.int32)], axis=0)
    grid = (n_blocks,)

    flops = 2 * m_pad * K_EMB * V_PAD
    bytes_accessed = (ids.size * 4 + table.size * 2 + m_pad * V_PAD * 4)

    out = pl.pallas_call(
        _bigram_kernel,
        out_shape=jax.ShapeDtypeStruct((m_pad, V_PAD), jnp.float32),
        grid_spec=pltpu.PrefetchScalarGridSpec(
            num_scalar_prefetch=0,
            grid=grid,
            in_specs=[
                pl.BlockSpec((tm, 2), lambda i: (i, 0)),         # per-tile ids
                pl.BlockSpec((K_EMB, V_PAD), lambda i: (0, 0)),  # resident table
            ],
            out_specs=pl.BlockSpec((tm, V_PAD), lambda i: (i, 0)),
        ),
        compiler_params=pltpu.CompilerParams(
            dimension_semantics=("parallel",)),
        cost_estimate=pl.CostEstimate(flops=flops, transcendentals=0,
                                      bytes_accessed=bytes_accessed),
    )(ids, table)
    return out[:M]


class BigramLMPallas:
    """Deterministically initialized parameters + forward pass."""

    def __init__(self, key):
        k1, k2, k3, k4 = jax.random.split(key, 4)
        # nn.Embedding default init: N(0, 1)
        self.token_embedding_table = jax.random.normal(
            k1, (VOCAB_SIZE, D_MODEL), dtype=jnp.float32)
        self.positional_encodings_table = jax.random.normal(
            k2, (BLOCK_SIZE, D_MODEL), dtype=jnp.float32)
        # nn.Linear default init: U(-1/sqrt(in), 1/sqrt(in)); stored (D, V)
        bound = 1.0 / (D_MODEL ** 0.5)
        self.lin_w = jax.random.uniform(
            k3, (D_MODEL, VOCAB_SIZE), minval=-bound, maxval=bound,
            dtype=jnp.float32)
        self.lin_b = jax.random.uniform(
            k4, (VOCAB_SIZE,), minval=-bound, maxval=bound, dtype=jnp.float32)

        # --- fold the Linear layer into the embedding tables (offline, f32) ---
        # TW[v]  = tok_emb[v] @ W          (token rows, vocab-padded to 128)
        # PWb[p] = pos_emb[p] @ W + b      (positional rows; bias lives here so
        #                                   it is added exactly once per token)
        tok_pad = jnp.zeros((V_PAD, D_MODEL), jnp.float32)
        tok_pad = tok_pad.at[:VOCAB_SIZE].set(self.token_embedding_table)
        tw = tok_pad @ self.lin_w                                 # (128, 65)
        pwb = self.positional_encodings_table @ self.lin_w + self.lin_b  # (256, 65)
        folded = jnp.zeros((K_EMB, V_PAD), jnp.float32)
        folded = folded.at[:V_PAD, :VOCAB_SIZE].set(tw)
        folded = folded.at[V_PAD:, :VOCAB_SIZE].set(pwb)
        # Padded vocab columns stay exactly zero and are sliced off in glue.
        self.table_bf16 = folded.astype(jnp.bfloat16)             # (384, 128)

    @functools.partial(jax.jit, static_argnums=0)
    def _logits(self, idx):
        B, T = idx.shape
        # Glue: per-row (token id, V_PAD + position) pairs; the gather + linear
        # both happen inside the kernel against the VMEM-resident folded table.
        tok_ids = idx.reshape(-1).astype(jnp.int32)
        pos_ids = jnp.tile(jnp.arange(T, dtype=jnp.int32), B) + V_PAD
        ids = jnp.stack([tok_ids, pos_ids], axis=1)               # (B*T, 2)
        flat = bigram_logits(ids, self.table_bf16)                # (B*T, V_PAD)
        return flat[:, :VOCAB_SIZE].reshape(B, T, VOCAB_SIZE)

    def forward(self, idx, targets=None):
        B, T = idx.shape
        assert T <= BLOCK_SIZE, "sequence longer than positional table"
        logits = self._logits(idx)                                # (B, T, V)
        if targets is None:
            loss = None
        else:
            # TODO(synk): cross-entropy partials could be fused into the kernel
            # (mask padded vocab cols to -inf before logsumexp); kept in glue.
            flat_logits = logits.reshape(B * T, VOCAB_SIZE)
            flat_targets = targets.reshape(B * T)
            logp = jax.nn.log_softmax(flat_logits, axis=-1)
            loss = -jnp.mean(
                jnp.take_along_axis(logp, flat_targets[:, None], axis=-1))
        return logits, loss


if __name__ == "__main__":
    key = jax.random.PRNGKey(0)
    model = BigramLMPallas(key)

    B, T = 2, 8
    idx = jax.random.randint(jax.random.PRNGKey(1), (B, T), 0, VOCAB_SIZE,
                             dtype=jnp.int32)
    targets = jax.random.randint(jax.random.PRNGKey(2), (B, T), 0, VOCAB_SIZE,
                                 dtype=jnp.int32)

    logits, loss = model.forward(idx, targets=None)
    jax.block_until_ready(logits)
    assert logits.shape == (B, T, VOCAB_SIZE)
    assert loss is None

    logits2, loss2 = model.forward(idx, targets=targets)
    jax.block_until_ready(loss2)
    assert loss2.shape == ()

    # Reference 1: same folded-bf16 table gathered in plain JAX (tight check —
    # the kernel's one-hot MXU sum of two bf16 rows in f32 is exact).
    tbl = model.table_bf16.astype(jnp.float32)
    ref_fold = (tbl[idx.reshape(-1)] +
                tbl[V_PAD + jnp.tile(jnp.arange(T), B)])[:, :VOCAB_SIZE]
    ref_fold = ref_fold.reshape(B, T, VOCAB_SIZE)
    assert jnp.allclose(logits, ref_fold, atol=1e-5, rtol=1e-5), \
        float(jnp.max(jnp.abs(logits - ref_fold)))

    # Reference 2: the module's pure-f32 math (tolerance covers the single bf16
    # quantization of the folded tables).
    tok32 = jnp.take(model.token_embedding_table, idx, axis=0)
    ref32 = (tok32 + model.positional_encodings_table[:T]) @ model.lin_w \
        + model.lin_b
    assert jnp.allclose(logits, ref32, atol=5e-2, rtol=5e-2), \
        float(jnp.max(jnp.abs(logits - ref32)))

    print("KERNEL_OK")
</pallas_src>

<mosaic_0001>
module attributes {stable_mosaic.version = 11 : i64} {
  func.func @_bigram_kernel(%arg0: i32, %arg1: memref<16x2xi32, #tpu.memory_space<vmem>>, %arg2: memref<384x128xbf16, #tpu.memory_space<vmem>>, %arg3: memref<16x128xf32, #tpu.memory_space<vmem>>) attributes {dimension_semantics = [#tpu.dimension_semantics<parallel>], iteration_bounds = array<i64: 1>, scalar_prefetch = 0 : i64, scratch_operands = 0 : i64, tpu.core_type = #tpu.core_type<tc>, window_params = [{transform_indices = @transform_0, window_bounds = array<i64: 16, 2>}, {pipeline_mode = #tpu.pipeline_mode<synchronous>, transform_indices = @transform_1, window_bounds = array<i64: 384, 128>}, {transform_indices = @transform_2, window_bounds = array<i64: 16, 128>}]} {
    %c0 = arith.constant 0 : index
    %c0_0 = arith.constant 0 : index
    %0 = vector.load %arg1[%c0, %c0_0] : memref<16x2xi32, #tpu.memory_space<vmem>>, vector<16x2xi32>
    %1 = tpu.iota {dimensions = array<i32: 1>} : vector<16x384xi32>
    %2 = vector.extract_strided_slice %0 {offsets = [0, 0], sizes = [16, 1], strides = [1, 1]} : vector<16x2xi32> to vector<16x1xi32>
    %3 = vector.broadcast %2 : vector<16x1xi32> to vector<16x384xi32>
    %4 = arith.cmpi eq, %1, %3 : vector<16x384xi32>
    %5 = vector.extract_strided_slice %0 {offsets = [0, 1], sizes = [16, 1], strides = [1, 1]} : vector<16x2xi32> to vector<16x1xi32>
    %6 = vector.broadcast %5 : vector<16x1xi32> to vector<16x384xi32>
    %7 = arith.cmpi eq, %1, %6 : vector<16x384xi32>
    %8 = arith.ori %4, %7 : vector<16x384xi1>
    %9 = arith.extui %8 : vector<16x384xi1> to vector<16x384xi32>
    %10 = arith.sitofp %9 : vector<16x384xi32> to vector<16x384xf32>
    %11 = arith.truncf %10 : vector<16x384xf32> to vector<16x384xbf16>
    %c0_1 = arith.constant 0 : index
    %c0_2 = arith.constant 0 : index
    %12 = vector.load %arg2[%c0_1, %c0_2] : memref<384x128xbf16, #tpu.memory_space<vmem>>, vector<384x128xbf16>
    %cst = arith.constant dense<0.000000e+00> : vector<16x128xf32>
    %13 = tpu.matmul %11, %12, %cst {dimension_numbers = #tpu.dot_dimension_numbers<[1], [0], [0], [1], [0, 0, 1, 1], [], []>} : vector<16x384xbf16>, vector<384x128xbf16>, vector<16x128xf32> -> vector<16x128xf32>
    %c0_3 = arith.constant 0 : index
    %c0_4 = arith.constant 0 : index
    %14 = vector.load %arg3[%c0_3, %c0_4] : memref<16x128xf32, #tpu.memory_space<vmem>>, vector<16x128xf32>
    tpu.vector_store %arg3[%c0_3, %c0_4], %13 {strides = array<i32>} : memref<16x128xf32, #tpu.memory_space<vmem>>, vector<16x128xf32>,
    return
  }
  func.func @transform_0(%arg0: i32) -> (i32, i32) {
    %c0_i32 = arith.constant 0 : i32
    %c0_i32_0 = arith.constant 0 : i32
    return %arg0, %c0_i32 : i32, i32
  }
  func.func @transform_1(%arg0: i32) -> (i32, i32) {
    %c0_i32 = arith.constant 0 : i32
    %c0_i32_0 = arith.constant 0 : i32
    %c0_i32_1 = arith.constant 0 : i32
    return %c0_i32, %c0_i32_0 : i32, i32
  }
  func.func @transform_2(%arg0: i32) -> (i32, i32) {
    %c0_i32 = arith.constant 0 : i32
    %c0_i32_0 = arith.constant 0 : i32
    return %arg0, %c0_i32 : i32, i32
  }
}

</mosaic_0001>

<bundles_post_ra>
// kernel: _logits.1
= control target key start
LH: loop header
LB: loop body
LE: loop exit
PB: predicated region body
PF: predicated region fallthrough
CT: control target
= control target key end

     0   :  { %7 = vsyncpa [#allocation3], 0  ;;  %s486_s12 = smov [#allocation2]   ;;  %s487_s14 = smov 64   ;;  %s522_s0 = inlined_call_operand.vmem [shape: s32[16,2], index: 0, kind: input, shape index: {}]   ;;  %s523_s1 = inlined_call_operand.hbm [shape: bf16[384,128], index: 1, kind: input, shape index: {}]   ;;  %s524_s2 = inlined_call_operand.vmem [shape: f32[16,128], index: 2, kind: output, shape index: {}]  }
   0x1   :  { %s14_s11 = sshll.u32 %s523_s1, 4  ;;  %s16_s13 = sshll.u32 %s486_s12, 4  ;;  %s15_s11 = int_to_ptr.hbm [resolvable:$true] %s14_s11  ;;  %s17_s13 = int_to_ptr.vmem [resolvable:$true] %s16_s13 }
   0x2   :  { %s488_s15 = smov 4  }
   0x3   :  { %22 = dma.hbm_to_vmem [thread:$0]  %s15_s11, 3072, %s17_s13, [#allocation3], %s487_s14, %s487_s14, %s488_s15  }
   0x4   :  { %484 = dma.done.wait [#allocation3], 3072  }
   0x5   :  { %485 = vsyncadd [#allocation3], 4294964224  ;;  %v489_v0 = vmov 1   ;;  %v490_v1 = vmov 0   ;;  %v27_v2 = vld [vmem:[%s522_s0] sm:$0xff]  ;;  %v434_v3 = vld [vmem:[#allocation2 + $0x38] sm:$0xff]  ;;  %v29_v28 = vlaneseq }
   0x6   :  { %458 = vset.pattern.permute.xlu1 %v489_v0  ;;  %457 = vset.pattern.permute.xlu0 %v490_v1  ;;  %v442_v4 = vld [vmem:[#allocation2 + $0x78] sm:$0xff]  ;;  %v433_v6 = vld [vmem:[#allocation2 + $0x30] sm:$0xff]  ;;  %v28_v9 = vld [vmem:[%s522_s0 + $0x8] sm:$0xff]  ;;  %v491_v36 = vmov 1.0|1.0  }
   0x7   :  { %46 = vperm.xlu1 %458, %v27_v2   ;;  %34 = vperm.xlu0 %457, %v27_v2   ;;  %v450_v5 = vld [vmem:[#allocation2 + $0xb8] sm:$0xff]  ;;  %v441_v7 = vld [vmem:[#allocation2 + $0x70] sm:$0xff]  ;;  %v432_v10 = vld [vmem:[#allocation2 + $0x28] sm:$0xff]  ;;  %v30_v29 = vand.u32 127, %v29_v28 }
   0x8   :  { %270 = vmatpush.bf16.msra.mxu0 %v434_v3  ;;  %284 = vmatpush.bf16.msra.mxu1 %v442_v4  ;;  %v449_v8 = vld [vmem:[#allocation2 + $0xb0] sm:$0xff]  ;;  %v440_v11 = vld [vmem:[#allocation2 + $0x68] sm:$0xff]  ;;  %v431_v13 = vld [vmem:[#allocation2 + $0x20] sm:$0xff] }
   0x9   :  { %298 = vmatpush.bf16.msra.mxu2 %v450_v5  ;;  %v448_v12 = vld [vmem:[#allocation2 + $0xa8] sm:$0xff]  ;;  %v439_v14 = vld [vmem:[#allocation2 + $0x60] sm:$0xff]  ;;  %v430_v16 = vld [vmem:[#allocation2 + $0x18] sm:$0xff]  ;;  %v31_v32 = vadd.s32 128, %v30_v29  ;;  %v32_v33 = vadd.s32 256, %v30_v29 }
   0xa   :  { %v447_v15 = vld [vmem:[#allocation2 + $0xa0] sm:$0xff]  ;;  %v438_v17 = vld [vmem:[#allocation2 + $0x58] sm:$0xff]  ;;  %v429_v19 = vld [vmem:[#allocation2 + $0x10] sm:$0xff] }
   0xb   :  { %v446_v18 = vld [vmem:[#allocation2 + $0x98] sm:$0xff]  ;;  %v437_v20 = vld [vmem:[#allocation2 + $0x50] sm:$0xff]  ;;  %v428_v22 = vld [vmem:[#allocation2 + $0x8] sm:$0xff] }
   0xc   :  { %271 = vmatpush.bf16.msra.mxu0 %v433_v6  ;;  %285 = vmatpush.bf16.msra.mxu1 %v441_v7  ;;  %v445_v21 = vld [vmem:[#allocation2 + $0x90] sm:$0xff]  ;;  %v436_v23 = vld [vmem:[#allocation2 + $0x48] sm:$0xff]  ;;  %v427_v25 = vld [vmem:[#allocation2] sm:$0xff] }
   0xd   :  { %299 = vmatpush.bf16.msra.mxu2 %v449_v8  ;;  %v444_v24 = vld [vmem:[#allocation2 + $0x88] sm:$0xff]  ;;  %v435_v26 = vld [vmem:[#allocation2 + $0x40] sm:$0xff] }
   0xe   :  { %v443_v27 = vld [vmem:[#allocation2 + $0x80] sm:$0xff] }
   0xf   :  { %49 = vperm.xlu1 %458, %v28_v9   ;;  %37 = vperm.xlu0 %457, %v28_v9  }
  0x10   :  { %272 = vmatpush.bf16.msra.mxu0 %v432_v10  ;;  %286 = vmatpush.bf16.msra.mxu1 %v440_v11 }
  0x11   :  { %300 = vmatpush.bf16.msra.mxu2 %v448_v12 }
  0x14   :  { %273 = vmatpush.bf16.msra.mxu0 %v431_v13  ;;  %287 = vmatpush.bf16.msra.mxu1 %v439_v14 }
  0x15   :  { %301 = vmatpush.bf16.msra.mxu2 %v447_v15 }
  0x17   :  { %459 = vset.pattern.permute.xlu0 %v489_v0 }
  0x18   :  { %274 = vmatpush.bf16.msra.mxu0 %v430_v16  ;;  %288 = vmatpush.bf16.msra.mxu1 %v438_v17 }
  0x19   :  { %302 = vmatpush.bf16.msra.mxu2 %v446_v18 }
  0x1c   :  { %275 = vmatpush.bf16.msra.mxu0 %v429_v19  ;;  %289 = vmatpush.bf16.msra.mxu1 %v437_v20 }
  0x1d   :  { %303 = vmatpush.bf16.msra.mxu2 %v445_v21 }
  0x20   :  { %276 = vmatpush.bf16.msra.mxu0 %v428_v22  ;;  %290 = vmatpush.bf16.msra.mxu1 %v436_v23 }
  0x21   :  { %304 = vmatpush.bf16.msra.mxu2 %v444_v24 }
  0x24   :  { %277 = vmatpush.bf16.msra.mxu0 %v427_v25  ;;  %291 = vmatpush.bf16.msra.mxu1 %v435_v26 }
  0x25   :  { %305 = vmatpush.bf16.msra.mxu2 %v443_v27 }
  0x79   :  { %v47_v30 = vpop.permute.xlu1 %46  ;;  %v35_v31 = vpop.permute.xlu0 %34 }
  0x7a   :  { %vm51_vm0 = vcmp.eq.s32.totalorder %v30_v29, %v47_v30  ;;  %vm39_vm1 = vcmp.eq.s32.totalorder %v30_v29, %v35_v31  ;;  %vm52_vm2 = vcmp.eq.s32.totalorder %v31_v32, %v47_v30  ;;  %vm40_vm3 = vcmp.eq.s32.totalorder %v31_v32, %v35_v31 }
  0x7b   :  { %vm53_vm4 = vcmp.eq.s32.totalorder %v32_v33, %v47_v30  ;;  %vm41_vm5 = vcmp.eq.s32.totalorder %v32_v33, %v35_v31  ;;  %vm57_vm6 = vmor %vm39_vm1, %vm51_vm0 }
  0x7c   :  { %vm58_vm7 = vmor %vm40_vm3, %vm52_vm2 }
  0x7d   :  { %vm59_vm11 = vmor %vm41_vm5, %vm53_vm4 }
  0x81   :  { %v50_v34 = vpop.permute.xlu1 %49  ;;  %v38_v35 = vpop.permute.xlu0 %37 }
  0x82   :  { %vm54_vm8 = vcmp.eq.s32.totalorder %v30_v29, %v50_v34  ;;  %vm55_vm9 = vcmp.eq.s32.totalorder %v31_v32, %v50_v34  ;;  %vm42_vm10 = vcmp.eq.s32.totalorder %v30_v29, %v38_v35  ;;  %vm43_vm12 = vcmp.eq.s32.totalorder %v31_v32, %v38_v35 }
  0x83   :  { %vm60_vm13 = vmor %vm42_vm10, %vm54_vm8  ;;  %vm56_vm14 = vcmp.eq.s32.totalorder %v32_v33, %v50_v34  ;;  %vm44_vm15 = vcmp.eq.s32.totalorder %v32_v33, %v38_v35 }
  0x84   :  { %vm421_vm0 = vmpackc.low %vm60_vm13, %vm57_vm6 }
  0x85   :  { %422 = vmatmul.msk.bf16.vlgmr.msra.gmra.mxu0 %vm421_vm0, %v491_v36  ;;  %vm61_vm1 = vmor %vm43_vm12, %vm55_vm9 }
  0x86   :  { %vm423_vm2 = vmpackc.low %vm61_vm1, %vm58_vm7 }
  0x87   :  { %424 = vmatmul.msk.bf16.vlgmr.msra.gmra.mxu1 %vm423_vm2, %v491_v36  ;;  %vm62_vm3 = vmor %vm44_vm15, %vm56_vm14 }
  0x88   :  { %vm425_vm4 = vmpackc.low %vm62_vm3, %vm59_vm11 }
  0x89   :  { %426 = vmatmul.msk.bf16.vlgmr.msra.gmra.mxu2 %vm425_vm4, %v491_v36 }
 0x102   :  { %v279_v37 = vpop.f32.mrf.mxu0 }
 0x104   :  { %v293_v38 = vpop.f32.mrf.mxu1 }
 0x105   :  { %v294_v39 = vadd.f32 %v293_v38, %v279_v37 }
 0x10a   :  { %v281_v42 = vpop.f32.mrf.mxu0 }
 0x10c   :  { %v307_v40 = vpop.f32.mrf.mxu2  ;;  %v295_v43 = vpop.f32.mrf.mxu1 }
 0x10d   :  { %v308_v41 = vadd.f32 %v307_v40, %v294_v39  ;;  %v296_v44 = vadd.f32 %v295_v43, %v281_v42 }
 0x10f   :  { %312 = vst [vmem:[%s524_s2] sm:$0xff] %v308_v41 }
 0x114   :  { %v309_v45 = vpop.f32.mrf.mxu2 }
 0x115   :  { %v310_v46 = vadd.f32 %v309_v45, %v296_v44 }
 0x117   :  { %313 = vst [vmem:[%s524_s2 + $0x8] sm:$0xff] %v310_v46 }
 0x118   :  { %318 = vsyncpa [#allocation3], 1 }

</bundles_post_ra>
